<compile_context>
chip_gen: v6e
topology: v6e:2x2x1
jax: 0.10.0
libtpu: 0.0.40
codegen_flags: <defaults>
</compile_context>

<pallas_src>
import functools

import numpy as np
import jax
import jax.numpy as jnp
from jax.experimental import pallas as pl
from jax.experimental.pallas import tpu as pltpu

_LANE = 128


def _pick_row_block(nb: int, max_rows: int = 1024) -> int:
    """Largest row-block that divides nb, keeps tiles (8,128)-legal, caps VMEM."""
    if nb <= max_rows:
        return nb  # full extent along that dim is always legal
    for r in range(max_rows, 7, -1):
        if nb % r == 0 and r % 8 == 0:
            return r
    return nb  # no nice divisor: take the whole row axis in one block


def _permute_kernel(perm_ref, x_ref, o_ref):
    # The permutation is applied by the input BlockSpec index_map (DMA
    # addressing); the kernel is a pure pipelined copy.
    del perm_ref
    o_ref[...] = x_ref[...]


@functools.lru_cache(maxsize=None)
def _make_permute_call(B, C, nb, rb, dtype):
    """Compiled pallas_call: out[b, c, :, :] = in[b, perm[c], :, :]."""
    blk = (1, 1, rb, _LANE)

    def in_map(b, c, n, perm_ref):      # gather via DMA addressing
        return (b, perm_ref[c], n, 0)

    def out_map(b, c, n, perm_ref):
        return (b, c, n, 0)

    return pl.pallas_call(
        _permute_kernel,
        out_shape=jax.ShapeDtypeStruct((B, C, nb, _LANE), dtype),
        grid_spec=pltpu.PrefetchScalarGridSpec(
            num_scalar_prefetch=1,            # perm indices live in SMEM
            grid=(B, C, nb // rb),
            in_specs=[pl.BlockSpec(blk, in_map)],
            out_specs=pl.BlockSpec(blk, out_map),
        ),
        compiler_params=pltpu.CompilerParams(
            dimension_semantics=("parallel", "parallel", "parallel")),
    )


def apply_permutation(x, perm):
    """out[:, c] = x[:, perm[c]] for NC(...) tensors."""
    B, C = int(x.shape[0]), int(x.shape[1])
    spatial = x.shape[2:]
    N = int(np.prod(spatial)) if len(spatial) > 0 else 1
    perm_i32 = jnp.asarray(perm, dtype=jnp.int32)

    if N % _LANE != 0:
        # Misaligned / degenerate spatial size: XLA gather beats a masked-store
        # kernel here.
        return jnp.take(x, perm_i32, axis=1)

    nb = N // _LANE
    rb = _pick_row_block(nb)
    x4 = x.reshape(B, C, nb, _LANE)           # free (row-major contiguous) reshape
    fn = _make_permute_call(B, C, nb, rb, x4.dtype)
    out = fn(perm_i32, x4)
    return out.reshape(x.shape)


class PermuteLayer:
    """JAX/Pallas port of FrEIA permute_layer (fixed seeded channel permutation)."""

    def __init__(self, dims_in, seed):
        self.in_channels = dims_in[0][0]
        # Same RNG semantics as np.random.seed(seed); np.random.permutation(...)
        rng = np.random.RandomState(seed)
        self.perm = rng.permutation(self.in_channels)
        self.perm_inv = np.zeros_like(self.perm)
        for i, p in enumerate(self.perm):
            self.perm_inv[p] = i

    def forward(self, x_list, rev=False):
        x = x_list[0]
        perm = self.perm_inv if rev else self.perm
        return [apply_permutation(x, perm)]

    def jacobian(self, x, rev=False):
        return 0.0

    def output_dims(self, input_dims):
        assert len(input_dims) == 1, 'Can only use 1 input'
        return input_dims


if __name__ == "__main__":
    # Small shapes consistent with the module: NCHW, permute over C.
    B, C, H, W = 2, 8, 16, 16
    seed = 1234

    key = jax.random.PRNGKey(0)
    x = jax.random.normal(key, (B, C, H, W), dtype=jnp.float32)

    layer = PermuteLayer(dims_in=[(C, H, W)], seed=seed)

    # Forward (non-reversed) — goes through the Pallas kernel (H*W = 256 is
    # lane-aligned).
    out = layer.forward([x], rev=False)[0]
    out = jax.block_until_ready(out)

    # Reference: pure-numpy channel gather, identical to x[:, perm] in torch.
    x_np = np.asarray(x)
    ref = x_np[:, np.asarray(layer.perm)]
    assert out.shape == x.shape and out.dtype == x.dtype
    np.testing.assert_array_equal(np.asarray(out), ref)

    # Reverse must invert the forward exactly (reuses the same compiled kernel,
    # only the scalar-prefetched perm array changes).
    back = layer.forward([out], rev=True)[0]
    back = jax.block_until_ready(back)
    np.testing.assert_array_equal(np.asarray(back), x_np)

    print("KERNEL_OK")
</pallas_src>

<mosaic_0001>
module attributes {stable_mosaic.version = 11 : i64} {
  func.func @_permute_kernel(%arg0: i32, %arg1: i32, %arg2: i32, %arg3: memref<8xi32, #tpu.memory_space<smem>>, %arg4: memref<1x1x2x128xf32, #tpu.memory_space<vmem>>, %arg5: memref<1x1x2x128xf32, #tpu.memory_space<vmem>>) attributes {dimension_semantics = [#tpu.dimension_semantics<parallel>, #tpu.dimension_semantics<parallel>, #tpu.dimension_semantics<parallel>], iteration_bounds = array<i64: 2, 8, 1>, scalar_prefetch = 1 : i64, scratch_operands = 0 : i64, tpu.core_type = #tpu.core_type<tc>, window_params = [{transform_indices = @transform_0, window_bounds = array<i64: 1, 1, 2, 128>}, {transform_indices = @transform_1, window_bounds = array<i64: 1, 1, 2, 128>}]} {
    %c0 = arith.constant 0 : index
    %c0_0 = arith.constant 0 : index
    %c0_1 = arith.constant 0 : index
    %c0_2 = arith.constant 0 : index
    %0 = vector.load %arg4[%c0, %c0_0, %c0_1, %c0_2] : memref<1x1x2x128xf32, #tpu.memory_space<vmem>>, vector<1x1x2x128xf32>
    %c0_3 = arith.constant 0 : index
    %c0_4 = arith.constant 0 : index
    %c0_5 = arith.constant 0 : index
    %c0_6 = arith.constant 0 : index
    %1 = vector.load %arg5[%c0_3, %c0_4, %c0_5, %c0_6] : memref<1x1x2x128xf32, #tpu.memory_space<vmem>>, vector<1x1x2x128xf32>
    tpu.vector_store %arg5[%c0_3, %c0_4, %c0_5, %c0_6], %0 {strides = array<i32>} : memref<1x1x2x128xf32, #tpu.memory_space<vmem>>, vector<1x1x2x128xf32>,
    return
  }
  func.func @transform_0(%arg0: i32, %arg1: i32, %arg2: i32, %arg3: memref<8xi32, #tpu.memory_space<smem>>) -> (i32, i32, i32, i32) {
    %0 = arith.index_cast %arg1 : i32 to index
    %1 = memref.load %arg3[%0] : memref<8xi32, #tpu.memory_space<smem>>
    %c0_i32 = arith.constant 0 : i32
    %c0_i32_0 = arith.constant 0 : i32
    return %arg0, %1, %arg2, %c0_i32 : i32, i32, i32, i32
  }
  func.func @transform_1(%arg0: i32, %arg1: i32, %arg2: i32, %arg3: memref<8xi32, #tpu.memory_space<smem>>) -> (i32, i32, i32, i32) {
    %c0_i32 = arith.constant 0 : i32
    %c0_i32_0 = arith.constant 0 : i32
    return %arg0, %arg1, %arg2, %c0_i32 : i32, i32, i32, i32
  }
}

</mosaic_0001>

<bundles_post_ra>
// kernel: tpu_custom_call.1
= control target key start
LH: loop header
LB: loop body
LE: loop exit
PB: predicated region body
PF: predicated region fallthrough
CT: control target
= control target key end

     0   :  { %s562_s9 = smov [#allocation3]   ;;  %s787_s0 = inlined_call_operand.hbm [shape: s32[8], index: 0, kind: input, shape index: {}]   ;;  %s788_s1 = inlined_call_operand.hbm [shape: f32[2,8,2,128], index: 1, kind: input, shape index: {}]   ;;  %s789_s2 = inlined_call_operand.hbm [shape: f32[2,8,2,128], index: 2, kind: output, shape index: {}]  }
   0x1   :  { %8 = dma.hbm_to_smem %s787_s0, 16, %s562_s9, [#allocation2] }
   0x2   :  { %508 = dma.done.wait [#allocation2], 16 }
   0x3   :  { %509 = vsyncadd [#allocation2], 4294967280 }
   0x4   :  { %10 = sfence }
   0x5   :  { %11 = vsyncpa [#allocation5], 0 }
   0x6   :  { %13 = vsyncpa [#allocation5 + $0x1], 0 }
   0x7   :  { %14 = vsyncpa [#allocation6], 0 }
   0x8   :  { %16 = vsyncpa [#allocation6 + $0x1], 0  ;;  %s583_s12 = smov 0   ;;  %s585_s13 = smov 0  }
   0x9   :  { %s587_s14 = smov 0   ;;  %s589_s15 = smov 0  }
   0xa   :  { %s591_s16 = smov 0   ;;  %s593_s17 = smov 0  }
   0xb   :  { %s595_s0 = smov 0   ;;  %s597_s18 = smov 0  }
   0xc   :  { %s599_s19 = smov 0   ;;  %s601_s20 = smov 0  }
   0xd   :  { %s603_s21 = smov 0  }
   0xe LB: > { %796 = sst [smem:[#allocation13_spill]] %s540_s17  ;;  %s280_s22 = sadd.s32 4294967295, %s560_s21   ;;  %s560_s21 = sphi %s603_s21, %s22_s21   ;;  %s556_s20 = sphi %s601_s20, %s821_s20   ;;  %s552_s19 = sphi %s599_s19, %s813_s19   ;;  %s548_s18 = sphi %s597_s18, %s820_s18   ;;  %s544_s0 = sphi %s595_s0, %s812_s0   ;;  %s540_s17 = sphi %s593_s17, %s811_s17   ;;  %s536_s16 = sphi %s591_s16, %s819_s16   ;;  %s532_s15 = sphi %s589_s15, %s818_s15   ;;  %s528_s14 = sphi %s587_s14, %s817_s14   ;;  %s524_s13 = sphi %s585_s13, %s816_s13   ;;  %s520_s12 = sphi %s583_s12, %s815_s12  }
   0xf   : > { %797 = sst [smem:[#allocation14_spill]] %s552_s19  ;;  %s281_s23 = sadd.s32 4294967294, %s560_s21  }
  0x10   : > { %s37_s24 = sadd.s32 1, %s552_s19  ;;  %s41_s25 = sadd.s32 1, %s556_s20 }
  0x11   : > { %p39_p0 = scmp.ge.s32.totalorder %s37_s24, 8  ;;  %s45_s26 = sld [smem:[#allocation3 + %s552_s19]] }
  0x12   : > { %s54_s27 = sadd.s32 1, %s540_s17  ;;  %p61_p1 = scmp.ne.s32.totalorder %s540_s17, %s536_s16 }
  0x13   : > { %s823_s24 = smov (%p39_p0, %s37_s24), 0  ;;  %s825_s25 = smov (!%p39_p0, %s41_s25), %s556_s20 }
  0x14   : > { %798 = sst [smem:[#allocation15_spill]] %s823_s24  ;;  %p43_p2 = scmp.ge.s32.totalorder %s825_s25, 2 }
  0x15   : > { %s46_s28 = sld [smem:[#allocation3 + %s823_s24]]  ;;  %p67_p3 = scmp.ne.s32.totalorder %s536_s16, %s532_s15 }
  0x16   : > { %p62_p4 = scmp.eq.s32.totalorder %s560_s21, 0  ;;  %p68_p5 = scmp.eq.s32.totalorder %s280_s22, 0 }
  0x17   : > { %s827_s25 = smov (%p43_p2, %s825_s25), 0  ;;  %s78_s30 = ssub.s32 %s552_s19, %s823_s24 }
  0x18   : > { %799 = sst [smem:[#allocation16_spill]] %s827_s25  ;;  %p652_p6 = por %p68_p5, %p67_p3 }
  0x19   : > { %s47_s3 = ssub.s32 %s556_s20, %s827_s25  ;;  %s84_s4 = sadd.s32 1, %s528_s14 }
  0x1a   : > { %s800_s29 = scalar_select %p652_p6, 1, 0 }
  0x1b   : > { %s48_s5 = ssub.s32 %s45_s26, %s46_s28  ;;  %s79_s6 = sor.u32 %s78_s30, %s47_s3 }
  0x1c   : > { %s49_s7 = sor.u32 %s48_s5, %s47_s3  ;;  %p82_p7 = scmp.eq.s32.totalorder %s79_s6, 0 }
  0x1d   : > { %p52_p8 = scmp.eq.s32.totalorder %s49_s7, 0  ;;  %p94_p9 = scmp.ne.s32.totalorder %s528_s14, %s524_s13 }
  0x1e   : > { %s664_s8 = scalar_select %p82_p7, %s528_s14, %s84_s4  }
  0x1f   : > { %s667_s9 = scalar_select %p52_p8, %s540_s17, %s54_s27  }
  0x20   : > { %p95_p10 = scmp.eq.s32.totalorder %s280_s22, 15  ;;  %p100_p11 = scmp.ne.s32.totalorder %s524_s13, %s520_s12 }
  0x21   : > { %801 = sst [smem:[#allocation17_spill]] %s667_s9  ;;  %p101_p12 = scmp.eq.s32.totalorder %s281_s23, 15 }
  0x22   : > { %p63_p13 = por %p62_p4, %p61_p1  ;;  %p678_p0 = por %p95_p10, %p94_p9 }
  0x23   : > { %p682_p2 = por %p101_p12, %p100_p11  ;;  %s121_s15 = sand.u32 1, %s540_s17  }
  0x24   : > { %s802_s10 = scalar_select %p678_p0, 1, 0 }
  0x25   : > { %s803_s11 = scalar_select %p682_p2, 1, 0 }
  0x26   : > { %p311_p3 = scmp.lt.s32.totalorder %s560_s21, 16  ;;  %s284_s26 = sshll.u32 %s121_s15, 1 }
  0x27   : > { %s295_s22 = scalar_select %p63_p13, [#allocation3], [#allocation8] }
  0x28   : > { %s296_s27 = scalar_select %p63_p13, %s552_s19, 0 }
  0x29   : > { %s829_s22 = smov (!%p311_p3, %s295_s22), [#allocation9]  ;;  %p689_p5 = pnand %p311_p3, %p63_p13 }
  0x2a   : > { %s831_s27 = smov (!%p311_p3, %s296_s27), 0  ;;  %p287_p1 = scmp.ge.s32.totalorder %s560_s21, 1 }
  0x2b   : > { %s126_s28 = sld [smem:[%s829_s22 + %s831_s27]]  ;;  %p141_p4 = scmp.lt.s32.totalorder %s560_s21, 17 }
  0x2c   : > { %s285_s30 = sshll.u32 %s556_s20, 3  ;;  %s125_s3 = scalar_lea.vmem [#allocation4], %s284_s26 }
  0x2d   : > { %s136_s4 = sshll.u32 %s125_s3, 4  ;;  %p696_p7 = pnand %p287_p1, %p141_p4  ;;  %s700_s4 = int_to_ptr.vmem [resolvable:$true] %s136_s4 }
  0x2e   : > { %s122_s9 = scalar_lea.sflag [#allocation5], %s121_s15  ;;  %p412_p9 = pneg %p689_p5 }
  0x2f   : > { %s805_s5 = scalar_select %p696_p7, 1, 0 }
  0x30   : > { %s415_s27 = scalar_lea.hbm %s788_s1, 512 }
  0x31   : > { %s132_s6 = sadd.s32 %s285_s30, %s126_s28 }
  0x32   : > { %s286_s7 = sshll.u32 %s132_s6, 5 }
  0x33   : > { %s134_s19 = scalar_lea.hbm %s788_s1, %s286_s7 }
  0x34   : > { %s410_s17 = scalar_lea.hbm %s134_s19, 32  ;;  %p416_p12 = scmp.lt.s32.totalorder %s134_s19, %s788_s1 }
  0x35   : > { %p411_p8 = scmp.ne.s32.totalorder %s134_s19, %s410_s17  ;;  %p417_p13 = scmp.lt.s32.totalorder %s415_s27, %s410_s17 }
  0x37   : > { %p413_p10 = pnand %p412_p9, %p411_p8  ;;  %p418_p3 = por %p417_p13, %p416_p12 }
  0x39   : > { %p414_p11 = pneg %p413_p10 }
  0x3b   : > { %p419_p1 = pnand %p418_p3, %p414_p11 }
  0x3d   : > { %422 = shalt.err (!%p419_p1)
}
  0x3e   : > { %s423_s24 = scalar_lea.vmem %s700_s4, 32  ;;  %s563_s25 = smov [#allocation4]  }
  0x3f   : > { %p424_p4 = scmp.ne.s32.totalorder %s700_s4, %s423_s24  ;;  %s428_s15 = sshll.u32 %s563_s25, 4  ;;  %s429_s15 = int_to_ptr.vmem [resolvable:$false] %s428_s15 }
  0x40   : > { %s430_s30 = scalar_lea.vmem %s429_s15, 64  ;;  %p431_p10 = scmp.lt.s32.totalorder %s700_s4, %s429_s15 }
  0x41   : > { %p426_p2 = pnand %p424_p4, %p412_p9  ;;  %p432_p0 = scmp.lt.s32.totalorder %s430_s30, %s423_s24 }
  0x43   : > { %p427_p8 = pneg %p426_p2  ;;  %p433_p6 = por %p432_p0, %p431_p10 }
  0x45   : > { %p434_p7 = pnand %p433_p6, %p427_p8 }
  0x47   : > { %437 = shalt.err (!%p434_p7)
}
  0x48   : > { %306 = dma.hbm_to_vmem [thread:$0]  (!%p689_p5), %s134_s19, 32, %s700_s4, %s122_s9  }
  0x49   : > { %p806_p11 = scmp.ne.s32.totalorder %s805_s5, 0 }
  0x4a   : > { %s147_s17 = sand.u32 (!%p806_p11), 1, %s536_s16   ;;  %p807_p2 = scmp.ne.s32.totalorder (!%p806_p11), %s800_s29, 0 }
  0x4b   : > { %145 = sbr.rel (%p806_p11) target bundleno = 108 (0x6c), region = 24  ;;  %s288_s6 = sshll.u32 (!%p806_p11), %s147_s17, 1 }
  0x4c   : > { %s148_s7 = scalar_lea.sflag (!%p806_p11), [#allocation5], %s147_s17  ;;  %s151_s26 = scalar_lea.vmem (!%p806_p11), [#allocation4], %s288_s6 }
  0x50   : > { %511 = dma.done.wait (%p807_p2), %s148_s7, 32  }
  0x51   : > { %513 = vsyncadd (%p807_p2), %s148_s7, 4294967264  ;;  %s167_s23 = sand.u32 1, %s524_s13   ;;  %s291_s19 = sshll.u32 %s548_s18, 3  ;;  %v171_v0 = vld [vmem:[%s151_s26] sm:$0x3] }
  0x52   : > { %s289_s9 = sshll.u32 %s167_s23, 1  ;;  %s186_s4 = sadd.s32 %s544_s0, %s291_s19 }
  0x53   : > { %s169_s5 = scalar_lea.vmem [#allocation7], %s289_s9  ;;  %s292_s27 = sshll.u32 %s186_s4, 5 }
  0x54   : > { %s190_s22 = sshll.u32 %s169_s5, 4  ;;  %s188_s29 = scalar_lea.hbm %s789_s2, %s292_s27  ;;  %172 = vst [vmem:[%s169_s5] sm:$0x3] %v171_v0  ;;  %s729_s22 = int_to_ptr.vmem [resolvable:$true] %s190_s22 }
  0x55   : > { %s174_s24 = scalar_lea.sflag [#allocation6], %s167_s23  ;;  %s438_s25 = scalar_lea.vmem %s729_s22, 32 }
  0x56   : > { %p439_p6 = scmp.ne.s32.totalorder %s729_s22, %s438_s25  ;;  %p808_p0 = scmp.ne.s32.totalorder %s802_s10, 0 }
  0x57   : > { %s564_s0 = smov [#allocation7]  }
  0x58   : > { %p440_p5 = pnand %p439_p6, %p808_p0  ;;  %s442_s18 = sshll.u32 %s564_s0, 4  ;;  %s443_s18 = int_to_ptr.vmem [resolvable:$false] %s442_s18 }
  0x59   : > { %s444_s15 = scalar_lea.vmem %s443_s18, 64  ;;  %p445_p9 = scmp.lt.s32.totalorder %s729_s22, %s443_s18 }
  0x5a   : > { %p441_p7 = pneg %p440_p5  ;;  %p446_p12 = scmp.lt.s32.totalorder %s444_s15, %s438_s25 }
  0x5c   : > { %p447_p13 = por %p446_p12, %p445_p9 }
  0x5e   : > { %p448_p3 = pnand %p447_p13, %p441_p7 }
  0x60   : > { %451 = shalt.err (!%p448_p3)
}
  0x61   : > { %s452_s30 = scalar_lea.hbm %s188_s29, 32  ;;  %s456_s7 = scalar_lea.hbm %s789_s2, 512 }
  0x62   : > { %p453_p1 = scmp.ne.s32.totalorder %s188_s29, %s452_s30  ;;  %p457_p10 = scmp.lt.s32.totalorder %s188_s29, %s789_s2 }
  0x63   : > { %p458_p11 = scmp.lt.s32.totalorder %s456_s7, %s452_s30 }
  0x64   : > { %p454_p4 = pnand %p453_p1, %p808_p0 }
  0x65   : > { %p459_p2 = por %p458_p11, %p457_p10 }
  0x66   : > { %p455_p8 = pneg %p454_p4 }
  0x68   : > { %p460_p6 = pnand %p459_p2, %p455_p8 }
  0x6a   : > { %463 = shalt.err (!%p460_p6)
}
  0x6b   : > { %299 = dma.vmem_to_hbm [thread:$0]  (%p808_p0), %s729_s22, 32, %s188_s29, %s174_s24  }
  0x6c PF: > { %p312_p5 = scmp.ge.s32.totalorder %s560_s21, 2  ;;  %s202_s19 = sand.u32 1, %s520_s12  }
  0x6d   : > { %p809_p7 = scmp.ne.s32.totalorder %s803_s11, 0  ;;  %s203_s9 = scalar_lea.sflag [#allocation6], %s202_s19 }
  0x6f   : > { %p308_p9 = pnand %p312_p5, %p809_p7 }
  0x71   : > { %p309_p12 = pneg %p308_p9 }
  0x73   : > { %515 = dma.done.wait (%p309_p12), %s203_s9, 32  }
  0x74   : > { %517 = vsyncadd (%p309_p12), %s203_s9, 4294967264  ;;  %s22_s21 = sadd.s32 1, %s560_s21   ;;  %s810_s10 = sld [smem:[#allocation13_spill]] }
  0x75   : > { %p19_p13 = scmp.ge.s32.totalorder %s22_s21, 18   ;;  %s811_s17 = sld [smem:[#allocation17_spill]] }
  0x76   : > { %s812_s0 = sld [smem:[#allocation14_spill]]  ;;  %s815_s12 = smov %s524_s13 }
  0x77   : > { %s813_s19 = sld [smem:[#allocation15_spill]]  ;;  %s816_s13 = smov %s528_s14 }
  0x78   : > { %s814_s4 = sld [smem:[#allocation16_spill]]  ;;  %s817_s14 = smov %s664_s8 }
  0x79   : > { %s818_s15 = smov %s536_s16  ;;  %s820_s18 = smov %s556_s20 }
  0x7a   : > { %s819_s16 = smov %s810_s10  ;;  %21 = sbr.rel (!%p19_p13) target bundleno = 14 (0xe), region = 69 }
  0x7e   : > { %s821_s20 = smov %s814_s4 }
  0x7f   :  { %208 = vsyncpa [#allocation5], 1 }
  0x80   :  { %210 = vsyncpa [#allocation5 + $0x1], 1 }
  0x81   :  { %211 = vsyncpa [#allocation6], 1 }
  0x82   :  { %213 = vsyncpa [#allocation6 + $0x1], 1 }

</bundles_post_ra>
